<compile_context>
chip_gen: v7x
topology: tpu7x:2x2x1
jax: 0.10.0
libtpu: 0.0.40
codegen_flags: <defaults>
</compile_context>

<pallas_src>
import functools

import jax
import jax.numpy as jnp
from jax.experimental import pallas as pl
from jax.experimental.pallas import tpu as pltpu

EPS = 1e-5


def _round_up(v, m):
    return ((v + m - 1) // m) * m


def _vmem_limit(est_bytes):
    try:
        cap = int(0.85 * pltpu.get_tpu_info().vmem_capacity_bytes)
    except Exception:  # conservative fallback if the query is unavailable
        cap = 64 * 1024 * 1024
    return int(min(cap, max(32 * 1024 * 1024, 2 * est_bytes)))


def _skip_embed_kernel(x_ref, w_ref, b_ref, g_ref, beta_ref, o_ref, *,
                       d_out, d_out_pad, compute_dtype):
    # x_ref:    (tm, d_in)            native dtype row tile of the input
    # w_ref:    (d_in, 2*d_out_pad)   bf16 fused weights [We | Ws] (pre-transposed)
    # b_ref:    (1, 2*d_out_pad)      f32 fused biases  [be | bs]
    # g_ref:    (1, d_out_pad)        f32 LayerNorm gamma (zero in padded cols)
    # beta_ref: (1, d_out_pad)        f32 LayerNorm beta  (zero in padded cols)
    # o_ref:    (tm, d_out_pad)       output tile
    x = x_ref[...].astype(compute_dtype)   # in-kernel cast; no wrapper astype pass

    # Single MXU pass for both branches, f32 accumulation, single fused bias add.
    y = jnp.dot(x, w_ref[...], preferred_element_type=jnp.float32)
    y = y + b_ref[...]

    h = y[:, :d_out_pad]      # embed branch pre-norm (128-aligned column split)
    skip = y[:, d_out_pad:]   # skip branch result

    # Two-pass LayerNorm stats over the TRUE d_out (padded cols of h are exactly 0).
    inv_d = 1.0 / d_out
    mu = jnp.sum(h, axis=-1, keepdims=True) * inv_d
    c = h - mu
    if d_out_pad != d_out:
        # padded cols have h==0 but (h - mu) == -mu; mask them out of the variance
        lane = jax.lax.broadcasted_iota(jnp.int32, h.shape, dimension=1)
        c = jnp.where(lane < d_out, c, 0.0)
    var = jnp.sum(c * c, axis=-1, keepdims=True) * inv_d
    hn = c * jax.lax.rsqrt(var + EPS)
    emb = jnp.maximum(hn * g_ref[...] + beta_ref[...], 0.0)

    o_ref[...] = (emb + skip).astype(o_ref.dtype)


def skip_embed_final_shallow(x, params, *, tm=1024, compute_dtype=jnp.bfloat16,
                             out_dtype=None):
    """x: (N, input_dim). params: dict of pre-transposed weights (see init_params).

    out_dtype defaults to x.dtype; pass jnp.bfloat16 to halve output writeback
    traffic if the consumer tolerates it.
    """
    N, d_in = x.shape
    d_out = params["gamma"].shape[-1]
    out_dtype = x.dtype if out_dtype is None else out_dtype

    # ---- column padding so the split point / output lanes stay 128-aligned ----
    d_out_pad = _round_up(d_out, 128)
    pad_c = d_out_pad - d_out

    def pad_cols(a):
        return jnp.pad(a, ((0, 0), (0, pad_c))) if pad_c else a

    # ---- parameter fusion (in production this is done once at init) ----
    w_cat = jnp.concatenate([pad_cols(params["we"]), pad_cols(params["ws"])],
                            axis=1).astype(compute_dtype)
    b_cat = jnp.concatenate([pad_cols(params["be"]), pad_cols(params["bs"])],
                            axis=1).astype(jnp.float32)
    gamma = pad_cols(params["gamma"]).astype(jnp.float32)
    beta = pad_cols(params["beta"]).astype(jnp.float32)

    # ---- row tiling: balance tiles (minimal padding), >=2 tiles for v7x 2-TC ----
    n_tiles = pl.cdiv(N, tm)
    if n_tiles == 1 and N > 8:
        n_tiles = 2                       # occupy both TensorCores on v7x
    tm_eff = _round_up(pl.cdiv(N, n_tiles), 8)
    n_tiles = pl.cdiv(N, tm_eff)
    n_pad = n_tiles * tm_eff

    x_in = x                              # native dtype; cast happens in-kernel
    if n_pad != N:
        x_in = jnp.pad(x_in, ((0, n_pad - N), (0, 0)))

    # ---- VMEM budget (weights single-buffered via Buffered(1)) ----
    cb = jnp.dtype(compute_dtype).itemsize
    ob = jnp.dtype(out_dtype).itemsize
    xb = jnp.dtype(x.dtype).itemsize
    est = (2 * tm_eff * d_in * xb                 # x tiles (double-buffered)
           + 2 * tm_eff * d_out_pad * ob          # output tiles (double-buffered)
           + d_in * 2 * d_out_pad * cb            # fused weights (single-buffered)
           + 4 * 2 * d_out_pad * 4                # biases / gamma / beta
           + 3 * tm_eff * 2 * d_out_pad * 4)      # f32 in-kernel temporaries

    kernel = functools.partial(_skip_embed_kernel, d_out=d_out,
                               d_out_pad=d_out_pad, compute_dtype=compute_dtype)
    const = pl.Buffered(1)                # grid-invariant operands: single-buffer

    out = pl.pallas_call(
        kernel,
        out_shape=jax.ShapeDtypeStruct((n_pad, d_out_pad), out_dtype),
        grid_spec=pltpu.PrefetchScalarGridSpec(
            num_scalar_prefetch=0,
            grid=(n_tiles,),
            in_specs=[
                pl.BlockSpec((tm_eff, d_in), lambda i: (i, 0)),               # x rows
                pl.BlockSpec((d_in, 2 * d_out_pad), lambda i: (0, 0),
                             pipeline_mode=const),                            # fused W
                pl.BlockSpec((1, 2 * d_out_pad), lambda i: (0, 0),
                             pipeline_mode=const),                            # fused b
                pl.BlockSpec((1, d_out_pad), lambda i: (0, 0),
                             pipeline_mode=const),                            # gamma
                pl.BlockSpec((1, d_out_pad), lambda i: (0, 0),
                             pipeline_mode=const),                            # beta
            ],
            out_specs=pl.BlockSpec((tm_eff, d_out_pad), lambda i: (i, 0)),
        ),
        compiler_params=pltpu.CompilerParams(
            dimension_semantics=("parallel",),
            vmem_limit_bytes=_vmem_limit(est),
        ),
    )(x_in, w_cat, b_cat, gamma, beta)

    if n_pad != N or pad_c:
        out = out[:N, :d_out]
    return out


def init_params(key, input_dim, output_dim):
    """Deterministic init mimicking PyTorch nn.Linear defaults (U(-1/sqrt(fan_in), +))."""
    k1, k2, k3, k4 = jax.random.split(key, 4)
    bound = 1.0 / jnp.sqrt(float(input_dim))
    # Stored already transposed: (input_dim, output_dim)
    we = jax.random.uniform(k1, (input_dim, output_dim), jnp.float32, -bound, bound)
    be = jax.random.uniform(k2, (1, output_dim), jnp.float32, -bound, bound)
    ws = jax.random.uniform(k3, (input_dim, output_dim), jnp.float32, -bound, bound)
    bs = jax.random.uniform(k4, (1, output_dim), jnp.float32, -bound, bound)
    gamma = jnp.ones((1, output_dim), jnp.float32)   # LayerNorm default affine
    beta = jnp.zeros((1, output_dim), jnp.float32)
    return {"we": we, "be": be, "ws": ws, "bs": bs, "gamma": gamma, "beta": beta}


def reference(x, p, compute_dtype=jnp.bfloat16):
    # Mirrors the kernel's bf16 quantization of x / weights so tolerances stay tight;
    # the math (two-pass biased variance, eps inside sqrt, affine, ReLU, skip-add)
    # matches the PyTorch module exactly.
    xq = x.astype(compute_dtype).astype(jnp.float32)
    we = p["we"].astype(compute_dtype).astype(jnp.float32)
    ws = p["ws"].astype(compute_dtype).astype(jnp.float32)
    h = xq @ we + p["be"]
    mu = jnp.mean(h, axis=-1, keepdims=True)
    var = jnp.mean((h - mu) ** 2, axis=-1, keepdims=True)
    hn = (h - mu) / jnp.sqrt(var + EPS) * p["gamma"] + p["beta"]
    emb = jnp.maximum(hn, 0.0)
    return emb + (xq @ ws + p["bs"])


if __name__ == "__main__":
    # Small shapes consistent with the module: batch N=16, input_dim=32,
    # latent_dim unused by the forward pass, output_dim=128.
    N, input_dim, output_dim = 16, 32, 128
    key = jax.random.PRNGKey(0)
    kx, kp = jax.random.split(key)
    x = jax.random.normal(kx, (N, input_dim), jnp.float32)
    params = init_params(kp, input_dim, output_dim)

    out = jax.block_until_ready(skip_embed_final_shallow(x, params))

    ref = reference(x, params)
    assert out.shape == (N, output_dim)
    # bf16 MXU operands (f32 accumulation) vs. bf16-quantized f32 reference.
    assert jnp.allclose(out, ref, atol=2e-2, rtol=2e-2), "mismatch vs reference"
    print("KERNEL_OK")
</pallas_src>

<mosaic_0001>
module attributes {stable_mosaic.version = 11 : i64} {
  func.func @_skip_embed_kernel(%arg0: i32, %arg1: memref<8x32xf32, #tpu.memory_space<vmem>>, %arg2: memref<32x256xbf16, #tpu.memory_space<vmem>>, %arg3: memref<1x256xf32, #tpu.memory_space<vmem>>, %arg4: memref<1x128xf32, #tpu.memory_space<vmem>>, %arg5: memref<1x128xf32, #tpu.memory_space<vmem>>, %arg6: memref<8x128xf32, #tpu.memory_space<vmem>>) attributes {dimension_semantics = [#tpu.dimension_semantics<parallel>], iteration_bounds = array<i64: 2>, scalar_prefetch = 0 : i64, scratch_operands = 0 : i64, tpu.core_type = #tpu.core_type<tc>, window_params = [{transform_indices = @transform_0, window_bounds = array<i64: 8, 32>}, {pipeline_mode = #tpu.pipeline_mode<synchronous>, transform_indices = @transform_1, window_bounds = array<i64: 32, 256>}, {pipeline_mode = #tpu.pipeline_mode<synchronous>, transform_indices = @transform_2, window_bounds = array<i64: 1, 256>}, {pipeline_mode = #tpu.pipeline_mode<synchronous>, transform_indices = @transform_3, window_bounds = array<i64: 1, 128>}, {pipeline_mode = #tpu.pipeline_mode<synchronous>, transform_indices = @transform_4, window_bounds = array<i64: 1, 128>}, {transform_indices = @transform_5, window_bounds = array<i64: 8, 128>}]} {
    %c0 = arith.constant 0 : index
    %c0_0 = arith.constant 0 : index
    %0 = vector.load %arg1[%c0, %c0_0] : memref<8x32xf32, #tpu.memory_space<vmem>>, vector<8x32xf32>
    %1 = arith.truncf %0 : vector<8x32xf32> to vector<8x32xbf16>
    %c0_1 = arith.constant 0 : index
    %c0_2 = arith.constant 0 : index
    %2 = vector.load %arg2[%c0_1, %c0_2] : memref<32x256xbf16, #tpu.memory_space<vmem>>, vector<32x256xbf16>
    %cst = arith.constant dense<0.000000e+00> : vector<8x256xf32>
    %3 = tpu.matmul %1, %2, %cst {dimension_numbers = #tpu.dot_dimension_numbers<[1], [0], [0], [1], [0, 0, 1, 1], [], []>} : vector<8x32xbf16>, vector<32x256xbf16>, vector<8x256xf32> -> vector<8x256xf32>
    %c0_3 = arith.constant 0 : index
    %c0_4 = arith.constant 0 : index
    %4 = vector.load %arg3[%c0_3, %c0_4] : memref<1x256xf32, #tpu.memory_space<vmem>>, vector<1x256xf32>
    %5 = vector.broadcast %4 : vector<1x256xf32> to vector<8x256xf32>
    %6 = arith.addf %3, %5 : vector<8x256xf32>
    %7 = vector.extract_strided_slice %6 {offsets = [0, 0], sizes = [8, 128], strides = [1, 1]} : vector<8x256xf32> to vector<8x128xf32>
    %8 = vector.extract_strided_slice %6 {offsets = [0, 128], sizes = [8, 128], strides = [1, 1]} : vector<8x256xf32> to vector<8x128xf32>
    %cst_5 = arith.constant dense<0.000000e+00> : vector<8xf32>
    %9 = vector.multi_reduction <add>, %7, %cst_5 [1] : vector<8x128xf32> to vector<8xf32>
    %10 = vector.shape_cast %9 : vector<8xf32> to vector<8x1xf32>
    %cst_6 = arith.constant 7.812500e-03 : f32
    %11 = vector.broadcast %cst_6 : f32 to vector<8x1xf32>
    %12 = arith.mulf %10, %11 : vector<8x1xf32>
    %13 = vector.broadcast %12 : vector<8x1xf32> to vector<8x128xf32>
    %14 = arith.subf %7, %13 : vector<8x128xf32>
    %15 = arith.mulf %14, %14 : vector<8x128xf32>
    %cst_7 = arith.constant dense<0.000000e+00> : vector<8xf32>
    %16 = vector.multi_reduction <add>, %15, %cst_7 [1] : vector<8x128xf32> to vector<8xf32>
    %17 = vector.shape_cast %16 : vector<8xf32> to vector<8x1xf32>
    %cst_8 = arith.constant 7.812500e-03 : f32
    %18 = vector.broadcast %cst_8 : f32 to vector<8x1xf32>
    %19 = arith.mulf %17, %18 : vector<8x1xf32>
    %cst_9 = arith.constant 9.99999974E-6 : f32
    %20 = vector.broadcast %cst_9 : f32 to vector<8x1xf32>
    %21 = arith.addf %19, %20 : vector<8x1xf32>
    %22 = math.rsqrt %21 : vector<8x1xf32>
    %23 = vector.broadcast %22 : vector<8x1xf32> to vector<8x128xf32>
    %24 = arith.mulf %14, %23 : vector<8x128xf32>
    %c0_10 = arith.constant 0 : index
    %c0_11 = arith.constant 0 : index
    %25 = vector.load %arg4[%c0_10, %c0_11] : memref<1x128xf32, #tpu.memory_space<vmem>>, vector<1x128xf32>
    %26 = vector.broadcast %25 : vector<1x128xf32> to vector<8x128xf32>
    %27 = arith.mulf %24, %26 : vector<8x128xf32>
    %c0_12 = arith.constant 0 : index
    %c0_13 = arith.constant 0 : index
    %28 = vector.load %arg5[%c0_12, %c0_13] : memref<1x128xf32, #tpu.memory_space<vmem>>, vector<1x128xf32>
    %29 = vector.broadcast %28 : vector<1x128xf32> to vector<8x128xf32>
    %30 = arith.addf %27, %29 : vector<8x128xf32>
    %cst_14 = arith.constant 0.000000e+00 : f32
    %31 = vector.broadcast %cst_14 : f32 to vector<8x128xf32>
    %32 = arith.maximumf %30, %31 : vector<8x128xf32>
    %33 = arith.addf %32, %8 : vector<8x128xf32>
    %c0_15 = arith.constant 0 : index
    %c0_16 = arith.constant 0 : index
    %34 = vector.load %arg6[%c0_15, %c0_16] : memref<8x128xf32, #tpu.memory_space<vmem>>, vector<8x128xf32>
    tpu.vector_store %arg6[%c0_15, %c0_16], %33 {strides = array<i32>} : memref<8x128xf32, #tpu.memory_space<vmem>>, vector<8x128xf32>,
    return
  }
  func.func @transform_0(%arg0: i32) -> (i32, i32) {
    %c0_i32 = arith.constant 0 : i32
    %c0_i32_0 = arith.constant 0 : i32
    return %arg0, %c0_i32 : i32, i32
  }
  func.func @transform_1(%arg0: i32) -> (i32, i32) {
    %c0_i32 = arith.constant 0 : i32
    %c0_i32_0 = arith.constant 0 : i32
    %c0_i32_1 = arith.constant 0 : i32
    return %c0_i32, %c0_i32_0 : i32, i32
  }
  func.func @transform_2(%arg0: i32) -> (i32, i32) {
    %c0_i32 = arith.constant 0 : i32
    %c0_i32_0 = arith.constant 0 : i32
    %c0_i32_1 = arith.constant 0 : i32
    return %c0_i32, %c0_i32_0 : i32, i32
  }
  func.func @transform_3(%arg0: i32) -> (i32, i32) {
    %c0_i32 = arith.constant 0 : i32
    %c0_i32_0 = arith.constant 0 : i32
    %c0_i32_1 = arith.constant 0 : i32
    return %c0_i32, %c0_i32_0 : i32, i32
  }
  func.func @transform_4(%arg0: i32) -> (i32, i32) {
    %c0_i32 = arith.constant 0 : i32
    %c0_i32_0 = arith.constant 0 : i32
    %c0_i32_1 = arith.constant 0 : i32
    return %c0_i32, %c0_i32_0 : i32, i32
  }
  func.func @transform_5(%arg0: i32) -> (i32, i32) {
    %c0_i32 = arith.constant 0 : i32
    %c0_i32_0 = arith.constant 0 : i32
    return %arg0, %c0_i32 : i32, i32
  }
}

</mosaic_0001>

<bundles_post_ra>
// kernel: tpu_custom_call.1
= control target key start
LH: loop header
LB: loop body
LE: loop exit
PB: predicated region body
PF: predicated region fallthrough
CT: control target
= control target key end

     0   :  { %10 = vsyncpa [#allocation3], 0  ;;  %s927_s0 = inlined_call_operand.hbm [shape: f32[16,32], index: 0, kind: input, shape index: {}]   ;;  %s928_s1 = inlined_call_operand.hbm [shape: bf16[32,256], index: 1, kind: input, shape index: {}]   ;;  %s929_s2 = inlined_call_operand.vmem [shape: f32[1,256], index: 2, kind: input, shape index: {}]   ;;  %s930_s3 = inlined_call_operand.vmem [shape: f32[1,128], index: 3, kind: input, shape index: {}]   ;;  %s931_s4 = inlined_call_operand.vmem [shape: f32[1,128], index: 4, kind: input, shape index: {}]   ;;  %s932_s5 = inlined_call_operand.hbm [shape: f32[16,128], index: 5, kind: output, shape index: {}]  }
   0x1   :  { %12 = vsyncpa [#allocation3 + $0x1], 0 }
   0x2   :  { %13 = vsyncpa [#allocation6], 0 }
   0x3   :  { %14 = vsyncpa [#allocation4], 0 }
   0x4   :  { %16 = vsyncpa [#allocation4 + $0x1], 0  ;;  %s718_s18 = smov 0   ;;  %s720_s19 = smov 0  }
   0x5   :  { %s722_s20 = smov 0   ;;  %s724_s21 = smov 0  }
   0x6 LB: > { %s739_s22 = sadd.s32 4294967295, %s680_s21   ;;  %s463_s23 = sadd.s32 4294967294, %s680_s21   ;;  %s680_s21 = sphi %s724_s21, %s952_s21   ;;  %s676_s20 = sphi %s722_s20, %s951_s20   ;;  %s672_s19 = sphi %s720_s19, %s950_s19   ;;  %s668_s18 = sphi %s718_s18, %s949_s18  }
   0x7   : > { %p42_p0 = scmp.ne.s32.totalorder %s672_s19, %s668_s18  ;;  %p933_p1 = scmp.eq.s32.totalorder %s739_s22, 0 }
   0x8   : > { %p156_p3 = scmp.eq.s32.totalorder %s463_s23, 1  ;;  %p464_p5 = scmp.ge.s32.totalorder %s680_s21, 1 }
   0x9   : > { %p748_p4 = por %p933_p1, %p42_p0  ;;  %p163_p7 = scmp.lt.s32.totalorder %s680_s21, 3 }
   0xa   : > { %p753_p6 = por %p156_p3, %p42_p0  ;;  %s682_s27 = smov [#allocation5]  }
   0xb   : > { %s936_s24 = scalar_select %p748_p4, 1, 0 }
   0xc   : > { %s937_s25 = scalar_select %p753_p6, 1, 0 }
   0xd   : > { %p758_p8 = pnand %p464_p5, %p163_p7  ;;  %s175_s28 = sshll.u32 %s682_s27, 4  ;;  %s762_s28 = int_to_ptr.vmem [resolvable:$true] %s175_s28 }
   0xe   : > { %s774_s30 = sadd.s32 1, %s680_s21   ;;  %s29_s6 = sadd.s32 1, %s676_s20 }
   0xf   : > { %s938_s26 = scalar_select %p758_p8, 1, 0 }
  0x10   : > { %p492_p9 = pneg %p758_p8  ;;  %s26_s7 = ssub.s32 %s680_s21, %s774_s30 }
  0x11   : > { %s552_s10 = scalar_lea.hbm %s928_s1, 512 }
  0x12   : > { %p769_p11 = pnand %p492_p9, %p933_p1  ;;  %p553_p12 = scmp.ne.s32.totalorder %s928_s1, %s552_s10 }
  0x13   : > { %p559_p5 = scmp.lt.u32.totalorder %s552_s10, %s928_s1 }
  0x14   : > { %p554_p13 = pneg %p769_p11 }
  0x16   : > { %p555_p0 = pnand %p554_p13, %p553_p12 }
  0x18   : > { %p556_p3 = pneg %p555_p0 }
  0x1a   : > { %p561_p7 = pnand %p559_p5, %p556_p3 }
  0x1c   : > { %564 = shalt.err (!%p561_p7)
}
  0x1d   : > { %s565_s15 = scalar_lea.vmem %s762_s28, 512  ;;  %p573_p2 = scmp.lt.s32.totalorder %s762_s28, %s762_s28 }
  0x1e   : > { %p566_p9 = scmp.ne.s32.totalorder %s762_s28, %s565_s15  ;;  %p574_p6 = scmp.lt.s32.totalorder %s565_s15, %s565_s15 }
  0x20   : > { %p568_p10 = pnand %p566_p9, %p554_p13  ;;  %p575_p4 = por %p574_p6, %p573_p2 }
  0x22   : > { %p569_p1 = pneg %p568_p10 }
  0x24   : > { %p576_p8 = pnand %p575_p4, %p569_p1 }
  0x26   : > { %579 = shalt.err (!%p576_p8)
}
  0x27   : > { %s683_s16 = smov 128   ;;  %s684_s17 = smov 8  }
  0x28   : > { %495 = dma.hbm_to_vmem [thread:$0]  (!%p769_p11), %s928_s1, 512, %s762_s28, [#allocation6], %s683_s16, %s683_s16, %s684_s17  }
  0x29   : > { %p27_p2 = scmp.eq.s32.totalorder %s26_s7, 0  ;;  %p36_p1 = scmp.ne.s32.totalorder %s676_s20, %s672_s19 }
  0x2a   : > { %p37_p4 = scmp.eq.s32.totalorder %s680_s21, 0  ;;  %p505_p6 = scmp.lt.s32.totalorder %s680_s21, 2 }
  0x2b   : > { %s805_s8 = scalar_select %p27_p2, %s676_s20, %s29_s6  }
  0x2c   : > { %p38_p8 = por %p37_p4, %p36_p1  ;;  %p940_p10 = scmp.eq.s32.totalorder %s739_s22, 1 }
  0x2d   : > { %s198_s10 = sand.u32 1, %s676_s20   ;;  %s468_s11 = sshll.u32 %s680_s21, 7 }
  0x2e   : > { %p809_p12 = por %p940_p10, %p36_p1  ;;  %s467_s12 = sshll.u32 %s198_s10, 3 }
  0x2f   : > { %s818_s14 = scalar_lea.hbm %s927_s0, %s468_s11  ;;  %s202_s28 = scalar_lea.vmem [#allocation2], %s467_s12 }
  0x30   : > { %s209_s6 = sshll.u32 %s202_s28, 4  ;;  %p820_p11 = pnand %p505_p6, %p38_p8  ;;  %s824_s6 = int_to_ptr.vmem [resolvable:$true] %s209_s6 }
  0x31   : > { %s199_s15 = scalar_lea.sflag [#allocation3], %s198_s10  ;;  %s580_s16 = scalar_lea.hbm %s818_s14, 128 }
  0x32   : > { %p581_p13 = scmp.ne.s32.totalorder %s818_s14, %s580_s16  ;;  %p582_p0 = pneg %p820_p11 }
  0x33   : > { %s585_s27 = scalar_lea.hbm %s927_s0, 256  ;;  %p586_p7 = scmp.lt.u32.totalorder %s818_s14, %s927_s0 }
  0x34   : > { %p583_p3 = pnand %p582_p0, %p581_p13  ;;  %p587_p9 = scmp.lt.u32.totalorder %s585_s27, %s580_s16 }
  0x35   : > { %p589_p1 = scmp.lt.u32.totalorder %s580_s16, %s818_s14 }
  0x36   : > { %p584_p5 = pneg %p583_p3  ;;  %p588_p2 = por %p587_p9, %p586_p7 }
  0x38   : > { %p590_p4 = por %p589_p1, %p588_p2 }
  0x3a   : > { %p591_p6 = pnand %p590_p4, %p584_p5 }
  0x3c   : > { %594 = shalt.err (!%p591_p6)
}
  0x3d   : > { %s595_s10 = scalar_lea.vmem %s824_s6, 128  ;;  %s685_s29 = smov [#allocation2]  }
  0x3e   : > { %p596_p8 = scmp.ne.s32.totalorder %s824_s6, %s595_s10  ;;  %s600_s13 = sshll.u32 %s685_s29, 4  ;;  %s601_s13 = int_to_ptr.vmem [resolvable:$false] %s600_s13 }
  0x3f   : > { %s602_s28 = scalar_lea.vmem %s601_s13, 256  ;;  %p603_p3 = scmp.lt.s32.totalorder %s824_s6, %s601_s13 }
  0x40   : > { %p598_p10 = pnand %p596_p8, %p582_p0  ;;  %p604_p7 = scmp.lt.s32.totalorder %s602_s28, %s595_s10 }
  0x42   : > { %p599_p13 = pneg %p598_p10  ;;  %p605_p9 = por %p604_p7, %p603_p3 }
  0x44   : > { %p606_p2 = pnand %p605_p9, %p599_p13 }
  0x46   : > { %609 = shalt.err (!%p606_p2)
}
  0x47   : > { %499 = dma.hbm_to_vmem [thread:$0]  (!%p820_p11), %s818_s14, 128, %s824_s6, %s199_s15  }
  0x48   : > { %p943_p5 = scmp.ne.s32.totalorder %s938_s26, 0 }
  0x49   : > { %s854_s16 = sand.u32 (!%p943_p5), 1, %s672_s19   ;;  %p944_p0 = scmp.ne.s32.totalorder (!%p943_p5), %s936_s24, 0 }
  0x4a   : > { %218 = sbr.rel (%p943_p5) target bundleno = 637 (0x27d), region = 40  ;;  %s470_s17 = sshll.u32 (!%p943_p5), %s854_s16, 3 }
  0x4b   : > { %s221_s23 = scalar_lea.sflag (!%p943_p5), [#allocation3], %s854_s16  ;;  %s224_s27 = scalar_lea.vmem (!%p943_p5), [#allocation2], %s470_s17 }
  0x51   : > { %655 = dma.done.wait (%p944_p0), %s221_s23, 128  }
  0x52   : > { %657 = vsyncadd (%p944_p0), %s221_s23, 4294967168  ;;  %p945_p11 = scmp.eq.s32.totalorder %s739_s22, 0 }
  0x54   : > { %659 = dma.done.wait (%p945_p11), [#allocation6], 512   ;;  %p946_p1 = pmov %p945_p11 }
  0x55   : > { %v686_v0 = vmov 0   ;;  %v544_v1 = vld [vmem:[#allocation5 + $0x4] ss:$8 sps:$4 sm:$0xff]   ;;  %v546_v2 = vld [vmem:[#allocation5] ss:$8 sps:$4 sm:$0xff]   ;;  %v256_v5 = vld [vmem:[%s224_s27] sm:$0xff]  ;;  %v264_v7 = vlaneseq }
  0x56   : > { %661 = vsyncadd (%p946_p1), [#allocation6], 4294966784  ;;  %330 = vmatprep.mubr.bf16.mxu0 %v686_v0  ;;  %298 = vmatprep.subr.bf16.mxu0 %v544_v1  ;;  %v547_v3 = vld [vmem:[#allocation5 + $0x14] ss:$8 sps:$4 sm:$0xff]   ;;  %v549_v4 = vld [vmem:[#allocation5 + $0x10] ss:$8 sps:$4 sm:$0xff]   ;;  %v257_v6 = vpack.c.bf16 %v256_v5, %v256_v5 }
  0x57   : > { %299 = vmatpush1.bf16.msra.mxu0 %v546_v2  ;;  %vm294_vm0 = vcmask 261120   ;;  %v265_v8 = vshrl.u32 %v264_v7, 7  ;;  %v262_v10 = vld [vmem:[%s929_s2] sm:$0x3]  ;;  %s481_s11 = sshll.u32 %s739_s22, 7  ;;  %s254_s12 = scalar_lea.vmem [#allocation7], %s470_s17 }
  0x58   : > { %300 = vmatprep.subr.bf16.mxu0 %v547_v3  ;;  %v478_v26 = vld [vmem:[%s930_s3] ss:$0 sm:$0xff]  ;;  %s383_s10 = sshll.u32 %s254_s12, 4  ;;  %s883_s28 = scalar_lea.hbm %s932_s5, %s481_s11  ;;  %s885_s10 = int_to_ptr.vmem [resolvable:$true] %s383_s10 }
  0x59   : > { %v266_v9 = vsub.s32 0, %v265_v8  ;;  %v270_v24 = vsub.s32 1, %v265_v8  ;;  %v479_v28 = vld [vmem:[%s931_s4] ss:$0 sm:$0xff]  ;;  %s370_s23 = scalar_lea.sflag [#allocation4], %s854_s16  ;;  %s610_s27 = scalar_lea.vmem %s885_s10, 128 }
  0x5a   : > { %p611_p4 = scmp.ne.s32.totalorder %s885_s10, %s610_s27  ;;  %s687_s22 = smov [#allocation7]  }
  0x5b   : > { %301 = vmatpush1.bf16.msra.mxu0 %v549_v4  ;;  %v267_v11 = vrot.slane %v262_v10, %v266_v9  ;;  %v271_v29 = vrot.slane %v262_v10, %v270_v24  ;;  %s614_s17 = sshll.u32 %s687_s22, 4  ;;  %s615_s17 = int_to_ptr.vmem [resolvable:$false] %s614_s17 }
  0x5c   : > { %p612_p6 = pnand %p611_p4, %p809_p12  ;;  %s616_s24 = scalar_lea.vmem %s615_s17, 256 }
  0x5d   : > { %p617_p10 = scmp.lt.s32.totalorder %s885_s10, %s615_s17  ;;  %p618_p13 = scmp.lt.s32.totalorder %s616_s24, %s610_s27 }
  0x5e   : > { %477 = vmatmul.mubr.msk.bf16.vlgmr.msra.gmra.mrb[0].mxu0 %vm294_vm0, %v257_v6  ;;  %p613_p8 = pneg %p612_p6 }
  0x5f   : > { %p619_p3 = por %p618_p13, %p617_p10 }
  0x61   : > { %p620_p7 = pnand %p619_p3, %p613_p8 }
 0x131   : > { %v332_v12 = vpop.f32.mrb[0].mxu0 }
 0x132   : > { %v333_v13 = vadd.f32 %v332_v12, %v267_v11  ;;  %v334_v14 = vpop.f32.mrb[1].mxu0 }
 0x133   : > { %v336_v15 = vpop.f32.mrb[2].mxu0  ;;  %v335_v32 = vadd.f32 %v334_v14, %v271_v29 }
 0x134   : > { %v337_v16 = vpop.f32.mrb[3].mxu0  ;;  %339 = vadd.xlane.f32.xlu0 %v333_v13 }
 0x1c1   : > { %v340_v17 = vpop.xlane.xlu0 %339 }
 0x1c2   : > { %v341_v18 = vmul.f32 0.0078125, %v340_v17 }
 0x1c4   : > { %v342_v19 = vsub.f32 %v333_v13, %v341_v18 }
 0x1c6   : > { %v343_v20 = vmul.f32 %v342_v19, %v342_v19 }
 0x1c8   : > { %344 = vadd.xlane.f32.xlu0 %v343_v20 }
 0x255   : > { %v345_v21 = vpop.xlane.xlu0 %344 }
 0x256   : > { %v346_v22 = vmul.f32 0.0078125, %v345_v21 }
 0x258   : > { %v347_v23 = vadd.f32 1e-05, %v346_v22 }
 0x25a   : > { %550 = vrsqrt.f32 %v347_v23 }
 0x264   : > { %v551_v25 = vpop.eup %550 }
 0x265   : > { %v349_v27 = vmul.f32 %v551_v25, %v342_v19 }
 0x267   : > { %v357_v30 = vmul.f32 %v478_v26, %v349_v27 }
 0x269   : > { %v365_v31 = vadd.f32 %v479_v28, %v357_v30 }
 0x26b   : > { %v366_v33 = vmax.f32 %v365_v31, 0.0 }
 0x26d   : > { %v367_v34 = vadd.f32 %v366_v33, %v335_v32 }
 0x26f   : > { %368 = vst [vmem:[%s254_s12] sm:$0xff] %v367_v34 }
 0x270   : > { %623 = shalt.err (!%p620_p7)
}
 0x271   : > { %s624_s16 = scalar_lea.hbm %s883_s28, 128  ;;  %s628_s6 = scalar_lea.hbm %s932_s5, 256 }
 0x272   : > { %p625_p9 = scmp.ne.s32.totalorder %s883_s28, %s624_s16  ;;  %p629_p0 = scmp.lt.u32.totalorder %s883_s28, %s932_s5 }
 0x273   : > { %p630_p11 = scmp.lt.u32.totalorder %s628_s6, %s624_s16  ;;  %p632_p4 = scmp.lt.u32.totalorder %s624_s16, %s883_s28 }
 0x274   : > { %p626_p2 = pnand %p625_p9, %p809_p12 }
 0x275   : > { %p631_p1 = por %p630_p11, %p629_p0 }
 0x276   : > { %p627_p5 = pneg %p626_p2 }
 0x277   : > { %p633_p6 = por %p632_p4, %p631_p1 }
 0x279   : > { %p634_p8 = pnand %p633_p6, %p627_p5 }
 0x27b   : > { %637 = shalt.err (!%p634_p8)
}
 0x27c   : > { %490 = dma.vmem_to_hbm [thread:$0]  (%p809_p12), %s885_s10, 128, %s883_s28, %s370_s23  }
 0x27d PF: > { %s395_s11 = sand.u32 1, %s668_s18   ;;  %p947_p10 = scmp.ne.s32.totalorder %s937_s25, 0 }
 0x27e   : > { %p948_p13 = scmp.ge.s32.totalorder %s680_s21, 2  ;;  %s396_s12 = scalar_lea.sflag [#allocation4], %s395_s11 }
 0x280   : > { %p501_p3 = pnand %p948_p13, %p947_p10 }
 0x282   : > { %663 = dma.done.wait (!%p501_p3), %s396_s12, 128  }
 0x283   : > { %665 = vsyncadd (!%p501_p3), %s396_s12, 4294967168  ;;  %p19_p7 = scmp.ge.s32.totalorder %s774_s30, 4   ;;  %s949_s18 = smov %s672_s19 }
 0x284   : > { %s950_s19 = smov %s676_s20  ;;  %s951_s20 = smov %s805_s8 }
 0x285   : > { %s952_s21 = smov %s774_s30  ;;  %21 = sbr.rel (!%p19_p7) target bundleno = 6 (0x6), region = 89 }
 0x28c   :  { %401 = vsyncpa [#allocation3], 1 }
 0x28d   :  { %403 = vsyncpa [#allocation3 + $0x1], 1 }
 0x28e   :  { %404 = vsyncpa [#allocation6], 1 }
 0x28f   :  { %405 = vsyncpa [#allocation4], 1 }
 0x290   :  { %407 = vsyncpa [#allocation4 + $0x1], 1 }

</bundles_post_ra>
